<compile_context>
chip_gen: v6e
topology: v6e:2x2x1
jax: 0.10.0
libtpu: 0.0.40
codegen_flags: <defaults>
</compile_context>

<pallas_src>
import jax
import jax.numpy as jnp
from jax.experimental import pallas as pl
from jax.experimental.pallas import tpu as pltpu


def _pick_class_tile(n_cls, n_ctx, d, itemsize, max_slab_bytes):
    """Largest class chunk whose ctx slab stays under max_slab_bytes.

    No divisor requirement: the last chunk is clamped (and may overlap the
    previous one), so awkward class counts (101, 397, ...) keep large chunks.
    """
    per_class = max(1, n_ctx * d * itemsize)
    return int(max(1, min(n_cls, max_slab_bytes // per_class)))


def _make_ctx_scatter_kernel(*, n_cls, n_ctx, tc, num_chunks):
    def kernel(emb_ref, ctx_ref, out_ref, slab_ref, sem_ref):
        # emb_ref : (N, n_cls, L, D) HBM, aliased with out_ref (never read here)
        # ctx_ref : (1, n_ctx, D)    VMEM block for ensemble n (DMA'd once per n)
        # out_ref : (N, n_cls, L, D) HBM prompts buffer (written via manual DMA)
        # slab_ref: (tc, n_ctx, D)   VMEM, ctx broadcast over tc classes
        # sem_ref : (2,) DMA semaphores (double-buffered writes)
        del emb_ref
        n = pl.program_id(0)
        c = pl.program_id(1)

        def copy(slot, class_off):
            return pltpu.make_async_copy(
                slab_ref,
                out_ref.at[n, pl.ds(class_off, tc), pl.ds(1, n_ctx), :],
                sem_ref.at[slot],
            )

        # (Re)build the ctx slab once per ensemble.  Safe w.r.t. in-flight DMAs:
        # the previous ensemble drained all of its writes at its last chunk.
        @pl.when(c == 0)
        def _():
            slab_ref[...] = jnp.broadcast_to(ctx_ref[...], slab_ref.shape)

        # Before reusing a semaphore slot, wait for the write issued 2 chunks ago.
        if num_chunks >= 3:
            @pl.when(c >= 2)
            def _():
                copy(c & 1, 0).wait()

        # Write-only scatter of the ctx rows of this class chunk.  The last chunk
        # is clamped to end at n_cls (possible benign overlap with the previous).
        off = jnp.minimum(c * tc, n_cls - tc)
        copy(c & 1, off).start()

        # Drain at the last chunk of each ensemble so every DMA issued on this
        # core is awaited before the slab is rebuilt / the kernel finishes.
        @pl.when(c == num_chunks - 1)
        def _():
            if num_chunks >= 2:
                copy((c - 1) & 1, 0).wait()
            copy(c & 1, 0).wait()

    return kernel


def prompt_learner_forward(ctx, embedding, *, n_cls, max_slab_bytes=4 * 1024 * 1024):
    """Assemble CoOp/CPLOT prompts (class_token_position == 'end').

    ctx:       (N, n_ctx, D)    learned generic context vectors.
    embedding: (N*n_cls, L, D)  token embedding of the tokenized class prompts;
               rows [1, 1+n_ctx) are placeholders replaced by ctx.  This buffer is
               aliased to the output (treat it as donated to this call).
    max_slab_bytes: VMEM budget for the broadcast ctx slab.  ~4 MiB is v7x-safe
               (64 MiB physical VMEM); v6e/v5e can pass up to 8 MiB.

    Returns prompts of shape (N*n_cls, L, D).
    """
    N, n_ctx, D = ctx.shape
    B, L, D2 = embedding.shape
    assert D2 == D and B == N * n_cls and 1 + n_ctx <= L

    dtype = embedding.dtype
    ctx = ctx.astype(dtype)                      # cast once here, not per grid step
    itemsize = jnp.dtype(dtype).itemsize

    tc = _pick_class_tile(n_cls, n_ctx, D, itemsize, max_slab_bytes)
    num_chunks = -(-n_cls // tc)                 # static ceil-div

    emb4 = embedding.reshape(N, n_cls, L, D)
    kernel = _make_ctx_scatter_kernel(
        n_cls=n_cls, n_ctx=n_ctx, tc=tc, num_chunks=num_chunks)

    # Grid: ensembles (parallel -> megacore on v7x when N >= 2) x class chunks
    # (arbitrary: carries the slab + DMA-semaphore state across chunks).
    # TODO(synk): when N == 1 all work lands on one TensorCore on v7x; a class-level
    # parallel split would be needed to use both cores' DMA queues in that case.
    out4 = pl.pallas_call(
        kernel,
        out_shape=jax.ShapeDtypeStruct((N, n_cls, L, D), dtype),
        grid_spec=pltpu.PrefetchScalarGridSpec(
            num_scalar_prefetch=0,
            grid=(N, num_chunks),
            in_specs=[
                pl.BlockSpec(memory_space=pl.ANY),                    # embedding stays in HBM
                pl.BlockSpec((1, n_ctx, D), lambda n, c: (n, 0, 0)),  # ctx, once per ensemble
            ],
            out_specs=pl.BlockSpec(memory_space=pl.ANY),              # written via manual DMA
            scratch_shapes=[
                pltpu.VMEM((tc, n_ctx, D), dtype),
                pltpu.SemaphoreType.DMA((2,)),
            ],
        ),
        # Alias embedding -> prompts: the SOS row and all suffix rows are never
        # touched by the kernel and keep their original values in the output.
        input_output_aliases={0: 0},
        compiler_params=pltpu.CompilerParams(
            dimension_semantics=("parallel", "arbitrary"),
            vmem_limit_bytes=32 * 1024 * 1024,
        ),
    )(emb4, ctx)
    return out4.reshape(B, L, D)


def _reference_forward(ctx, token_prefix, token_suffix, *, N, n_cls):
    # Pure-JAX reference mirroring the PyTorch code path (class_token_position='end').
    n_ctx, D = ctx.shape[1], ctx.shape[2]
    ctx_e = jnp.broadcast_to(ctx[None, :, :, :], (n_cls, N, n_ctx, D))  # unsqueeze+expand
    ctx_e = jnp.transpose(ctx_e, (1, 0, 2, 3)).reshape(N * n_cls, n_ctx, D)  # permute+view
    return jnp.concatenate([token_prefix, ctx_e.astype(token_prefix.dtype),
                            token_suffix], axis=1)


if __name__ == "__main__":
    # Small CLIP-like synthetic configuration.
    n_cls = 8          # number of classnames
    N = 2              # cfg.TRAINER.PLOT.N (number of prompt ensembles)
    n_ctx = 4          # cfg.TRAINER.PLOT.N_CTX
    ctx_dim = 128      # clip_model.ln_final.weight.shape[0] (512 in real CLIP)
    seq_len = 16       # tokenized prompt length (77 in real CLIP)
    dtype = jnp.float32

    key = jax.random.PRNGKey(0)
    k_ctx, k_emb = jax.random.split(key)

    # nn.init.normal_(ctx_vectors, std=0.02) -- generic context (N, n_ctx, ctx_dim)
    ctx = (0.02 * jax.random.normal(k_ctx, (N, n_ctx, ctx_dim))).astype(dtype)

    # Synthetic "token embedding" of the tokenized class prompts, one per class,
    # tiled N times (tokenized_prompts.repeat(N, 1) in the PyTorch code).
    # TODO(synk): real module builds these from clip.tokenize + clip_model.token_embedding.
    emb_cls = jax.random.normal(k_emb, (n_cls, seq_len, ctx_dim)).astype(dtype)

    def make_embedding():
        return jnp.tile(emb_cls, (N, 1, 1))      # (N*n_cls, seq_len, ctx_dim)

    embedding = make_embedding()
    token_prefix = embedding[:, :1, :]           # SOS embedding
    token_suffix = embedding[:, 1 + n_ctx:, :]   # class tokens + EOS + padding
    ref = jax.block_until_ready(
        _reference_forward(ctx, token_prefix, token_suffix, N=N, n_cls=n_cls))

    # 1) Default slab budget: TC == n_cls -> one write per ensemble.
    prompts = jax.block_until_ready(
        prompt_learner_forward(ctx, make_embedding(), n_cls=n_cls))
    assert prompts.shape == (N * n_cls, seq_len, ctx_dim), prompts.shape
    assert jnp.allclose(prompts, ref), "mismatch vs reference (single-chunk path)"

    # 2) Tiny slab budget: TC=3 -> 3 chunks/ensemble with a non-divisible class
    #    count, exercising double-buffered DMAs and the overlapping last chunk.
    tiny_budget = 3 * n_ctx * ctx_dim * jnp.dtype(dtype).itemsize
    prompts2 = jax.block_until_ready(
        prompt_learner_forward(ctx, make_embedding(), n_cls=n_cls,
                               max_slab_bytes=tiny_budget))
    assert jnp.allclose(prompts2, ref), "mismatch vs reference (multi-chunk path)"

    print("KERNEL_OK")
</pallas_src>

<mosaic_0001>
module attributes {stable_mosaic.version = 11 : i64} {
  func.func @kernel(%arg0: i32, %arg1: i32, %arg2: memref<2x8x16x128xf32, #tpu.memory_space<any>>, %arg3: memref<1x4x128xf32, #tpu.memory_space<vmem>>, %arg4: memref<2x8x16x128xf32, #tpu.memory_space<any>>, %arg5: memref<8x4x128xf32, #tpu.memory_space<vmem>>, %arg6: memref<2x!tpu.dma_semaphore, #tpu.memory_space<semaphore_mem>>) attributes {dimension_semantics = [#tpu.dimension_semantics<parallel>, #tpu.dimension_semantics<arbitrary>], iteration_bounds = array<i64: 2, 1>, scalar_prefetch = 0 : i64, scratch_operands = 2 : i64, tpu.core_type = #tpu.core_type<tc>, window_params = [{}, {transform_indices = @transform_1, window_bounds = array<i64: 1, 4, 128>}, {}]} {
    %c0_i32 = arith.constant 0 : i32
    %0 = arith.cmpi eq, %arg1, %c0_i32 : i32
    %1 = arith.extui %0 : i1 to i32
    %c0_i32_0 = arith.constant 0 : i32
    %2 = arith.cmpi ne, %1, %c0_i32_0 : i32
    scf.if %2 {
      %c0 = arith.constant 0 : index
      %c0_6 = arith.constant 0 : index
      %c0_7 = arith.constant 0 : index
      %13 = vector.load %arg3[%c0, %c0_6, %c0_7] : memref<1x4x128xf32, #tpu.memory_space<vmem>>, vector<1x4x128xf32>
      %14 = vector.shape_cast %13 : vector<1x4x128xf32> to vector<1x4x128xf32>
      %15 = vector.broadcast %14 : vector<1x4x128xf32> to vector<8x4x128xf32>
      %c0_8 = arith.constant 0 : index
      %c0_9 = arith.constant 0 : index
      %c0_10 = arith.constant 0 : index
      %16 = vector.load %arg5[%c0_8, %c0_9, %c0_10] : memref<8x4x128xf32, #tpu.memory_space<vmem>>, vector<8x4x128xf32>
      tpu.vector_store %arg5[%c0_8, %c0_9, %c0_10], %15 {strides = array<i32>} : memref<8x4x128xf32, #tpu.memory_space<vmem>>, vector<8x4x128xf32>,
    } else {
    }
    %c8_i32 = arith.constant 8 : i32
    %3 = arith.muli %arg1, %c8_i32 : i32
    %c0_i32_1 = arith.constant 0 : i32
    %4 = arith.minsi %3, %c0_i32_1 : i32
    %c1_i32 = arith.constant 1 : i32
    %5 = arith.andi %arg1, %c1_i32 : i32
    %c1_i32_2 = arith.constant 1 : i32
    %c0_i32_3 = arith.constant 0 : i32
    %6 = tpu.memref_slice %arg4[%arg0, %4, %c1_i32_2, %c0_i32_3] : memref<2x8x16x128xf32, #tpu.memory_space<any>> -> memref<1x8x4x128xf32, #tpu.memory_space<any>>
    %7 = tpu.memref_squeeze %6 : memref<1x8x4x128xf32, #tpu.memory_space<any>> -> memref<8x4x128xf32, #tpu.memory_space<any>>
    %8 = tpu.memref_slice %arg6[%5] : memref<2x!tpu.dma_semaphore, #tpu.memory_space<semaphore_mem>> -> memref<1x!tpu.dma_semaphore, #tpu.memory_space<semaphore_mem>>
    %9 = tpu.memref_squeeze %8 : memref<1x!tpu.dma_semaphore, #tpu.memory_space<semaphore_mem>> -> memref<!tpu.dma_semaphore, #tpu.memory_space<semaphore_mem>>
    tpu.enqueue_dma source(%arg5 : memref<8x4x128xf32, #tpu.memory_space<vmem>>) target(%7 : memref<8x4x128xf32, #tpu.memory_space<any>>) target_semaphore(%9 : memref<!tpu.dma_semaphore, #tpu.memory_space<semaphore_mem>>)
    %c0_i32_4 = arith.constant 0 : i32
    %10 = arith.cmpi eq, %arg1, %c0_i32_4 : i32
    %11 = arith.extui %10 : i1 to i32
    %c0_i32_5 = arith.constant 0 : i32
    %12 = arith.cmpi ne, %11, %c0_i32_5 : i32
    scf.if %12 {
      %c1_i32_6 = arith.constant 1 : i32
      %13 = arith.andi %arg1, %c1_i32_6 : i32
      %c0_i32_7 = arith.constant 0 : i32
      %c1_i32_8 = arith.constant 1 : i32
      %c0_i32_9 = arith.constant 0 : i32
      %14 = tpu.memref_slice %arg4[%arg0, %c0_i32_7, %c1_i32_8, %c0_i32_9] : memref<2x8x16x128xf32, #tpu.memory_space<any>> -> memref<1x8x4x128xf32, #tpu.memory_space<any>>
      %15 = tpu.memref_squeeze %14 : memref<1x8x4x128xf32, #tpu.memory_space<any>> -> memref<8x4x128xf32, #tpu.memory_space<any>>
      %16 = tpu.memref_slice %arg6[%13] : memref<2x!tpu.dma_semaphore, #tpu.memory_space<semaphore_mem>> -> memref<1x!tpu.dma_semaphore, #tpu.memory_space<semaphore_mem>>
      %17 = tpu.memref_squeeze %16 : memref<1x!tpu.dma_semaphore, #tpu.memory_space<semaphore_mem>> -> memref<!tpu.dma_semaphore, #tpu.memory_space<semaphore_mem>>
      tpu.wait_dma2 semaphore(%17 : memref<!tpu.dma_semaphore, #tpu.memory_space<semaphore_mem>>) src(%arg5 : memref<8x4x128xf32, #tpu.memory_space<vmem>>) dst(%15 : memref<8x4x128xf32, #tpu.memory_space<any>>)
    } else {
    }
    return
  }
  func.func @transform_1(%arg0: i32, %arg1: i32) -> (i32, i32, i32) {
    %c0_i32 = arith.constant 0 : i32
    %c0_i32_0 = arith.constant 0 : i32
    %c0_i32_1 = arith.constant 0 : i32
    return %arg0, %c0_i32, %c0_i32_0 : i32, i32, i32
  }
}

</mosaic_0001>

<bundles_post_ra>
// kernel: tpu_custom_call.1
= control target key start
LH: loop header
LB: loop body
LE: loop exit
PB: predicated region body
PF: predicated region fallthrough
CT: control target
= control target key end

     0   :  { %s264_s9 = smov 0   ;;  %s266_s10 = smov 0   ;;  %s318_s0 = inlined_call_operand.hbm [shape: f32[2,8,16,128], index: 0, kind: input, shape index: {}, may-alias: {0,2}]   ;;  %s319_s1 = inlined_call_operand.vmem [shape: f32[2,4,128], index: 1, kind: input, shape index: {}]   ;;  %s320_s2 = inlined_call_operand.hbm [shape: f32[2,8,16,128], index: 2, kind: output, shape index: {}, may-alias: {0,2}]  }
   0x1   :  { %s268_s11 = smov 0  }
   0x2 LB: > { %s21_s0 = sadd.s32 1, %s239_s10  ;;  %p161_p1 = scmp.lt.s32.totalorder %s243_s11, 1  ;;  %s243_s11 = sphi %s268_s11, %s12_s11   ;;  %s239_s10 = sphi %s266_s10, %s322_s10   ;;  %s235_s9 = sphi %s264_s9, %s321_s9  }
   0x3   : > { %p23_p0 = scmp.ge.s32.totalorder %s21_s0, 2  ;;  %p71_p2 = scmp.lt.s32.totalorder (!%p161_p1), %s235_s9, 1 }
   0x4   : > { %63 = sbr.rel (%p161_p1) target bundleno = 32 (0x20), region = 24  ;;  %s167_s12 = sshll.u32 (!%p161_p1), %s235_s9, 11 }
   0x5   : > { %s324_s0 = smov (%p23_p0, %s21_s0), 0  ;;  %s284_s15 = scalar_lea.hbm (!%p161_p1), %s320_s2, %s167_s12 }
   0x6   : > { %s287_s16 = scalar_lea.hbm (!%p161_p1), %s284_s15, 16  ;;  %s245_s17 = smov (!%p161_p1), [#allocation2]  }
   0x7   : > { %s100_s18 = sshll.u32 (!%p161_p1), %s245_s17, 4  ;;  %s289_s18 = int_to_ptr.vmem [resolvable:$true] %s100_s18 }
   0x8   : > { %s196_s23 = scalar_lea.vmem (!%p161_p1), %s289_s18, 512  ;;  %p201_p4 = scmp.lt.s32.totalorder (!%p161_p1), %s289_s18, %s289_s18 }
   0x9   : > { %s326_s9 = smov (!%p71_p2, %s235_s9), 1  ;;  %p197_p3 = scmp.ne.s32.totalorder %s289_s18, %s196_s23 }
   0xa   : > { %s162_s19 = sshll.u32 %s326_s9, 2  ;;  %p202_p5 = scmp.lt.s32.totalorder %s196_s23, %s196_s23 }
   0xb   : > { %s74_s22 = scalar_lea.vmem %s319_s1, %s162_s19 }
   0xc   : > { %v79_v0 = vld [vmem:[%s74_s22] sm:$0xf]  ;;  %p203_p6 = por %p202_p5, %p201_p4 }
   0xd   : > { %80 = vst [vmem:[#allocation2] sm:$0xf] %v79_v0  ;;  %81 = vst [vmem:[#allocation2 + $0x4] sm:$0xf] %v79_v0 }
   0xe   : > { %82 = vst [vmem:[#allocation2 + $0x8] sm:$0xf] %v79_v0  ;;  %83 = vst [vmem:[#allocation2 + $0xc] sm:$0xf] %v79_v0  ;;  %p204_p7 = pnand %p203_p6, %p197_p3 }
   0xf   : > { %84 = vst [vmem:[#allocation2 + $0x10] sm:$0xf] %v79_v0  ;;  %85 = vst [vmem:[#allocation2 + $0x14] sm:$0xf] %v79_v0 }
  0x10   : > { %86 = vst [vmem:[#allocation2 + $0x18] sm:$0xf] %v79_v0  ;;  %87 = vst [vmem:[#allocation2 + $0x1c] sm:$0xf] %v79_v0 }
  0x11   : > { %207 = shalt.err (!%p204_p7)  }
  0x12   : > { %s218_s24 = scalar_lea.hbm %s284_s15, 528  ;;  %s210_s27 = scalar_lea.hbm %s320_s2, 4096 }
  0x13   : > { %p209_p8 = scmp.ne.s32.totalorder %s287_s16, %s218_s24  ;;  %p211_p9 = scmp.lt.s32.totalorder %s287_s16, %s320_s2 }
  0x14   : > { %p212_p10 = scmp.lt.s32.totalorder %s210_s27, %s218_s24 }
  0x16   : > { %p213_p11 = por %p212_p10, %p211_p9 }
  0x18   : > { %p214_p12 = pnand %p213_p11, %p209_p8 }
  0x1a   : > { %217 = shalt.err (!%p214_p12)  }
  0x1b   : > { %s246_s30 = smov 64   ;;  %s247_s3 = smov 256  }
  0x1c   : > { %s248_s4 = smov 4  }
  0x1d   : > { %103 = dma.vmem_to_hbm [thread:$0]  %s289_s18, 512, %s287_s16, [#allocation3], %s246_s30, %s247_s3, %s248_s4 }
  0x1e   : > { %231 = dma.done.wait [#allocation3], 512 }
  0x1f   : > { %232 = vsyncadd [#allocation3], 4294966784 }
  0x20 PF: > { %s12_s11 = sadd.s32 1, %s243_s11   ;;  %s321_s9 = smov %s239_s10 }
  0x21   : > { %p9_p13 = scmp.ge.s32.totalorder %s12_s11, 3   ;;  %s322_s10 = smov %s324_s0 }
  0x23   :  { %11 = sbr.rel (!%p9_p13) target bundleno = 2 (0x2), region = 49 }
  0x28   :  { %111 = vsyncmov [#allocation3] }
  0x2b   :  { %s112_s5 = vpop.sfrf %111 }
  0x2c   :  { %p165_p0 = scmp.ne.s32.totalorder %s112_s5, 0 }
  0x2e   :  { %116 = shalt.err (%p165_p0)  }
  0x2f   :  { %118 = vsyncmov [#allocation3 + $0x1] }
  0x32   :  { %s119_s6 = vpop.sfrf %118 }
  0x33   :  { %p166_p1 = scmp.ne.s32.totalorder %s119_s6, 0 }
  0x35   :  { %123 = shalt.err (%p166_p1)  }

</bundles_post_ra>
